<compile_context>
chip_gen: v7x
topology: tpu7x:2x2x1
jax: 0.10.0
libtpu: 0.0.40
codegen_flags: <defaults>
</compile_context>

<pallas_src>
import functools

import jax
import jax.numpy as jnp
from jax import lax
from jax.experimental import pallas as pl
from jax.experimental.pallas import tpu as pltpu


def _round_up(x, m):
    return (x + m - 1) // m * m


def _vmem_budget_bytes(frac=0.75, fallback=48 * 1024 * 1024):
    """Per-generation VMEM budget (v5e/v6e: 128 MiB physical, v7x: 64 MiB)."""
    try:
        return int(pltpu.get_tpu_info().vmem_capacity_bytes * frac)
    except Exception:
        return fallback


def _default_tfidf_split():
    """Use 2 K-splits on v7x (2 TensorCores/chip), 1 elsewhere."""
    try:
        kind = jax.devices()[0].device_kind.lower()
    except Exception:
        return 1
    return 2 if "v7" in kind else 1


# ---------------------------------------------------------------------------
# Kernel 1: embedding lookup (one-hot gather on the MXU, bf16 hi/lo planes).
# ---------------------------------------------------------------------------
def split_embedding_weight(weight):
    """Split an f32 [V, D] weight into bf16 (hi, lo) planes.

    hi + lo reconstructs the f32 weight to ~2^-16 relative error, so a 0/1
    one-hot gather stays ~f32-accurate while each MXU matmul is a single,
    DEFAULT-precision bf16 pass (vs 6-pass f32 emulation under HIGHEST).
    """
    w = jnp.asarray(weight, jnp.float32)
    w_hi = w.astype(jnp.bfloat16)
    w_lo = (w - w_hi.astype(jnp.float32)).astype(jnp.bfloat16)
    return w_hi, w_lo


def _lookup_kernel(ids_ref, w_hi_ref, w_lo_ref, o_ref):
    k = pl.program_id(1)

    @pl.when(k == 0)
    def _init():
        o_ref[...] = jnp.zeros_like(o_ref)

    tv = w_hi_ref.shape[0]
    ids = ids_ref[...]                                            # (T, 1) int32
    vocab = k * tv + lax.broadcasted_iota(jnp.int32, (1, tv), 1)  # (1, tv)
    onehot = (ids == vocab).astype(jnp.bfloat16)                  # (T, tv) exact 0/1
    # Exact row selection: each output row picks exactly one (hi + lo) weight row;
    # out-of-range / padded ids match nothing and contribute zero.
    o_ref[...] += (
        jnp.dot(onehot, w_hi_ref[...], preferred_element_type=jnp.float32)
        + jnp.dot(onehot, w_lo_ref[...], preferred_element_type=jnp.float32)
    )


def _choose_lookup_vtile(v, d, t, budget):
    """Largest vocab tile whose working set fits the VMEM budget."""

    def vmem_bytes(tv, n_buf):
        weight = 2 * n_buf * tv * d * 2        # hi + lo bf16 planes, n_buf buffers each
        onehot = t * tv * (2 + 4)              # bf16 one-hot + compare temps
        io = 3 * t * d * 4 + 4 * t * 4         # double-buffered out + ids blocks
        return weight + onehot + io

    if vmem_bytes(v, 1) <= budget // 2:
        return v                               # whole weight stays VMEM-resident
    for cand in (8192, 4096, 2048, 1024, 512):
        if vmem_bytes(cand, 2) <= budget // 2:
            n_v = pl.cdiv(v, cand)
            return _round_up(pl.cdiv(v, n_v), 8)
    return 512


def embedding_lookup(ids, w_hi, w_lo, *, token_tile=256, vmem_budget=None):
    """Gather (w_hi + w_lo) rows for integer ids of any shape -> (*ids.shape, D)."""
    v, d = w_hi.shape
    ids_flat = ids.reshape(-1).astype(jnp.int32)
    n_tokens = ids_flat.shape[0]

    # Token tile adapts to small batches (multiple of 8 keeps stores unmasked).
    t = min(token_tile, _round_up(max(n_tokens, 1), 8))
    n_pad = _round_up(max(n_tokens, 1), t)
    # Padded slots get id == -1 which matches no vocab column -> zero rows.
    ids_col = (jnp.full((n_pad,), -1, jnp.int32).at[:n_tokens].set(ids_flat)
               .reshape(n_pad, 1))
    n_tiles = n_pad // t

    budget = _vmem_budget_bytes() if vmem_budget is None else vmem_budget
    tv = _choose_lookup_vtile(v, d, t, budget)
    if v % tv:
        # Huge-vocab streaming path: pad V to a tile multiple (zero rows are inert).
        # TODO(synk): pre-pad at Embedder init if this path is hit in production.
        v_pad = _round_up(v, tv)
        w_hi = jnp.zeros((v_pad, d), w_hi.dtype).at[:v].set(w_hi)
        w_lo = jnp.zeros((v_pad, d), w_lo.dtype).at[:v].set(w_lo)
        v = v_pad
    n_v = v // tv

    w_map = lambda i, k: (k, 0)

    def run(single_buffer_weight):
        if single_buffer_weight:
            # Constant block index -> never re-fetched; one buffer is enough.
            w_spec = pl.BlockSpec((tv, d), w_map, pipeline_mode=pl.Buffered(1))
        else:
            w_spec = pl.BlockSpec((tv, d), w_map)
        return pl.pallas_call(
            _lookup_kernel,
            out_shape=jax.ShapeDtypeStruct((n_pad, d), jnp.float32),
            grid=(n_tiles, n_v),
            in_specs=[
                pl.BlockSpec((t, 1), lambda i, k: (i, 0)),   # ids tile
                w_spec,                                      # hi plane
                w_spec,                                      # lo plane
            ],
            out_specs=pl.BlockSpec((t, d), lambda i, k: (i, 0)),
            compiler_params=pltpu.CompilerParams(
                dimension_semantics=("parallel", "arbitrary"),
                vmem_limit_bytes=budget,
            ),
        )(ids_col, w_hi, w_lo)

    if n_v == 1:
        try:
            out = run(single_buffer_weight=True)
        except Exception:
            # TODO(synk): pipeline_mode=pl.Buffered unsupported on this JAX version;
            # fall back to the default double-buffered resident weight.
            out = run(single_buffer_weight=False)
    else:
        out = run(single_buffer_weight=False)

    return out[:n_tokens].reshape(*ids.shape, d)


# ---------------------------------------------------------------------------
# Kernel 2: tf-idf path -> out = x @ W, K-tiled, accumulated in the resident
# f32 output block (init via pl.when), optional 2-way K split for v7x.
# ---------------------------------------------------------------------------
def _tfidf_kernel(x_ref, w_ref, o_ref, *, precision):
    @pl.when(pl.program_id(1) == 0)
    def _init():
        o_ref[...] = jnp.zeros_like(o_ref)

    o_ref[...] += jnp.dot(
        x_ref[...], w_ref[...],
        preferred_element_type=jnp.float32, precision=precision,
    )


def _tfidf_plan(v, k_tile, n_split):
    """K-tiling plan: (tile size, padded V, effective split count, inner K steps)."""
    tk = min(k_tile, _round_up(v, 128))
    n_k = pl.cdiv(v, tk)
    n_split = max(1, min(n_split, n_k))
    n_inner = pl.cdiv(n_k, n_split)
    return tk, tk * n_split * n_inner, n_split, n_inner


def pad_tfidf_weight(weight, *, k_tile=4096, n_split=1):
    """Zero-pad W's vocab axis once (call at init, NOT per forward call)."""
    v, d = weight.shape
    _, v_pad, _, _ = _tfidf_plan(v, k_tile, n_split)
    w = jnp.asarray(weight, jnp.float32)
    if v_pad == v:
        return w
    return jnp.zeros((v_pad, d), jnp.float32).at[:v].set(w)


def tfidf_matmul(x, weight, *, k_tile=4096, n_split=1,
                 precision=lax.Precision.DEFAULT):
    """out[B, D] = x[B, V] @ W[V, D].  `weight` may be pre-padded with
    pad_tfidf_weight (zero rows are inert), in which case no per-call copy of W
    is made; only the small x activation is padded per call."""
    b, v = x.shape
    d = weight.shape[1]
    tk, v_pad, n_split, n_inner = _tfidf_plan(v, k_tile, n_split)

    b_pad = _round_up(b, 8)                  # full sublanes -> unmasked stores
    x_p = jnp.zeros((b_pad, v_pad), jnp.float32).at[:b, :v].set(
        x.astype(jnp.float32))
    if weight.shape[0] == v_pad:
        w_p = jnp.asarray(weight, jnp.float32)      # pre-padded at init: no copy
    elif weight.shape[0] == v:
        w_p = jnp.zeros((v_pad, d), jnp.float32).at[:v].set(
            weight.astype(jnp.float32))
    else:
        raise ValueError("weight rows must equal V or the padded V for this plan")

    out = pl.pallas_call(
        functools.partial(_tfidf_kernel, precision=precision),
        out_shape=jax.ShapeDtypeStruct((n_split * b_pad, d), jnp.float32),
        grid=(n_split, n_inner),
        in_specs=[
            pl.BlockSpec((b_pad, tk), lambda s, k: (0, s * n_inner + k)),
            pl.BlockSpec((tk, d), lambda s, k: (s * n_inner + k, 0)),
        ],
        out_specs=pl.BlockSpec((b_pad, d), lambda s, k: (s, 0)),
        compiler_params=pltpu.CompilerParams(
            dimension_semantics=("parallel", "arbitrary"),   # v7x: 2 TCs share the K stream
            vmem_limit_bytes=32 * 1024 * 1024,
        ),
    )(x_p, w_p)

    if n_split > 1:
        out = out.reshape(n_split, b_pad, d).sum(axis=0)
    return out[:b]


# ---------------------------------------------------------------------------
# Embedder: parameter setup + dispatch (glue stays in plain JAX).
# ---------------------------------------------------------------------------
class Embedder:
    """JAX/Pallas port of deeploglizer's Embedder forward pass."""

    def __init__(self, vocab_size, embedding_dim, key=None,
                 pretrain_matrix=None, freeze=False, use_tfidf=False):
        del freeze  # forward-only port
        self.use_tfidf = use_tfidf
        if pretrain_matrix is not None:
            w = jnp.asarray(pretrain_matrix, jnp.float32)
        else:
            w = jax.random.normal(key, (vocab_size, embedding_dim), jnp.float32)
            w = w.at[1].set(0.0)   # nn.Embedding(padding_idx=1) zeroes this row
        self.weight = w

        if use_tfidf:
            # Weight padded ONCE here (was a per-forward-call HBM copy before).
            self._tfidf_k_tile = 4096
            self._tfidf_n_split = _default_tfidf_split()   # 2 on v7x, else 1
            self._tfidf_weight = pad_tfidf_weight(
                w, k_tile=self._tfidf_k_tile, n_split=self._tfidf_n_split)
        else:
            # bf16 hi/lo planes computed ONCE here: two single-pass MXU matmuls
            # per lookup instead of 6-pass f32 emulation (~2^-16 rel error).
            self._w_hi, self._w_lo = split_embedding_weight(w)

    def __call__(self, x):
        if self.use_tfidf:
            # TODO(synk): PyTorch computes this in float64; TPU has no f64, so it
            # runs with bf16 MXU products and f32 accumulation (DEFAULT precision).
            return tfidf_matmul(x, self._tfidf_weight,
                                k_tile=self._tfidf_k_tile,
                                n_split=self._tfidf_n_split)
        return embedding_lookup(x, self._w_hi, self._w_lo)


if __name__ == "__main__":
    VOCAB, DIM = 64, 128
    B, S = 2, 8

    key = jax.random.PRNGKey(0)
    k_w, k_ids, k_tfidf = jax.random.split(key, 3)

    # --- lookup path (use_tfidf=False) ---
    emb = Embedder(VOCAB, DIM, key=k_w, use_tfidf=False)
    x_ids = jax.random.randint(k_ids, (B, S), 0, VOCAB, dtype=jnp.int32)
    out = jax.block_until_ready(emb(x_ids))
    ref = emb.weight[x_ids]
    assert out.shape == (B, S, DIM)
    # hi/lo bf16 reconstruction matches the f32 weight to ~2^-16 rel.
    assert jnp.allclose(out, ref, atol=2e-4, rtol=1e-4), \
        float(jnp.max(jnp.abs(out - ref)))

    # --- tf-idf path (use_tfidf=True) ---
    emb_tfidf = Embedder(VOCAB, DIM, key=k_w, use_tfidf=True)
    x_tfidf = jax.random.uniform(k_tfidf, (B, VOCAB), jnp.float32)
    out_tfidf = jax.block_until_ready(emb_tfidf(x_tfidf))
    ref_tfidf = jnp.matmul(x_tfidf, emb_tfidf.weight,
                           precision=lax.Precision.HIGHEST)
    assert out_tfidf.shape == (B, DIM)
    # DEFAULT MXU precision (bf16 products, f32 accumulation) by design, per perf
    # review -> compare against the f32 reference at bf16-level tolerance.
    assert jnp.allclose(out_tfidf, ref_tfidf, atol=2e-1, rtol=2e-2), \
        float(jnp.max(jnp.abs(out_tfidf - ref_tfidf)))

    print("KERNEL_OK")
</pallas_src>

<mosaic_0001>
module attributes {stable_mosaic.version = 11 : i64} {
  func.func @_lookup_kernel(%arg0: i32, %arg1: i32, %arg2: memref<16x1xi32, #tpu.memory_space<vmem>>, %arg3: memref<64x128xbf16, #tpu.memory_space<vmem>>, %arg4: memref<64x128xbf16, #tpu.memory_space<vmem>>, %arg5: memref<16x128xf32, #tpu.memory_space<vmem>>) attributes {dimension_semantics = [#tpu.dimension_semantics<parallel>, #tpu.dimension_semantics<arbitrary>], iteration_bounds = array<i64: 1, 1>, scalar_prefetch = 0 : i64, scratch_operands = 0 : i64, tpu.core_type = #tpu.core_type<tc>, window_params = [{transform_indices = @transform_0, window_bounds = array<i64: 16, 1>}, {pipeline_mode = #tpu.pipeline_mode<synchronous>, transform_indices = @transform_1, window_bounds = array<i64: 64, 128>}, {pipeline_mode = #tpu.pipeline_mode<synchronous>, transform_indices = @transform_2, window_bounds = array<i64: 64, 128>}, {transform_indices = @transform_3, window_bounds = array<i64: 16, 128>}]} {
    %c0_i32 = arith.constant 0 : i32
    %0 = arith.cmpi eq, %arg1, %c0_i32 : i32
    %1 = arith.extui %0 : i1 to i32
    %c0_i32_0 = arith.constant 0 : i32
    %2 = arith.cmpi ne, %1, %c0_i32_0 : i32
    scf.if %2 {
      %cst_11 = arith.constant 0.000000e+00 : f32
      %22 = vector.broadcast %cst_11 : f32 to vector<16x128xf32>
      %c0_12 = arith.constant 0 : index
      %c0_13 = arith.constant 0 : index
      %23 = vector.load %arg5[%c0_12, %c0_13] : memref<16x128xf32, #tpu.memory_space<vmem>>, vector<16x128xf32>
      tpu.vector_store %arg5[%c0_12, %c0_13], %22 {strides = array<i32>} : memref<16x128xf32, #tpu.memory_space<vmem>>, vector<16x128xf32>,
    } else {
    }
    %c0 = arith.constant 0 : index
    %c0_1 = arith.constant 0 : index
    %3 = vector.load %arg2[%c0, %c0_1] : memref<16x1xi32, #tpu.memory_space<vmem>>, vector<16x1xi32>
    %c64_i32 = arith.constant 64 : i32
    %4 = arith.muli %arg1, %c64_i32 : i32
    %5 = tpu.iota {dimensions = array<i32: 1>} : vector<1x64xi32>
    %6 = vector.broadcast %4 : i32 to vector<1x64xi32>
    %7 = arith.addi %6, %5 : vector<1x64xi32>
    %8 = vector.broadcast %3 : vector<16x1xi32> to vector<16x64xi32>
    %9 = vector.broadcast %7 : vector<1x64xi32> to vector<16x64xi32>
    %10 = arith.cmpi eq, %8, %9 : vector<16x64xi32>
    %11 = arith.extui %10 : vector<16x64xi1> to vector<16x64xi32>
    %12 = arith.sitofp %11 : vector<16x64xi32> to vector<16x64xf32>
    %13 = arith.truncf %12 : vector<16x64xf32> to vector<16x64xbf16>
    %c0_2 = arith.constant 0 : index
    %c0_3 = arith.constant 0 : index
    %14 = vector.load %arg5[%c0_2, %c0_3] : memref<16x128xf32, #tpu.memory_space<vmem>>, vector<16x128xf32>
    %c0_4 = arith.constant 0 : index
    %c0_5 = arith.constant 0 : index
    %15 = vector.load %arg3[%c0_4, %c0_5] : memref<64x128xbf16, #tpu.memory_space<vmem>>, vector<64x128xbf16>
    %cst = arith.constant dense<0.000000e+00> : vector<16x128xf32>
    %16 = tpu.matmul %13, %15, %cst {dimension_numbers = #tpu.dot_dimension_numbers<[1], [0], [0], [1], [0, 0, 1, 1], [], []>} : vector<16x64xbf16>, vector<64x128xbf16>, vector<16x128xf32> -> vector<16x128xf32>
    %c0_6 = arith.constant 0 : index
    %c0_7 = arith.constant 0 : index
    %17 = vector.load %arg4[%c0_6, %c0_7] : memref<64x128xbf16, #tpu.memory_space<vmem>>, vector<64x128xbf16>
    %cst_8 = arith.constant dense<0.000000e+00> : vector<16x128xf32>
    %18 = tpu.matmul %13, %17, %cst_8 {dimension_numbers = #tpu.dot_dimension_numbers<[1], [0], [0], [1], [0, 0, 1, 1], [], []>} : vector<16x64xbf16>, vector<64x128xbf16>, vector<16x128xf32> -> vector<16x128xf32>
    %19 = arith.addf %16, %18 : vector<16x128xf32>
    %20 = arith.addf %14, %19 : vector<16x128xf32>
    %c0_9 = arith.constant 0 : index
    %c0_10 = arith.constant 0 : index
    %21 = vector.load %arg5[%c0_9, %c0_10] : memref<16x128xf32, #tpu.memory_space<vmem>>, vector<16x128xf32>
    tpu.vector_store %arg5[%c0_9, %c0_10], %20 {strides = array<i32>} : memref<16x128xf32, #tpu.memory_space<vmem>>, vector<16x128xf32>,
    return
  }
  func.func @transform_0(%arg0: i32, %arg1: i32) -> (i32, i32) {
    %c0_i32 = arith.constant 0 : i32
    %c0_i32_0 = arith.constant 0 : i32
    return %arg0, %c0_i32 : i32, i32
  }
  func.func @transform_1(%arg0: i32, %arg1: i32) -> (i32, i32) {
    %c0_i32 = arith.constant 0 : i32
    %c0_i32_0 = arith.constant 0 : i32
    return %arg1, %c0_i32 : i32, i32
  }
  func.func @transform_2(%arg0: i32, %arg1: i32) -> (i32, i32) {
    %c0_i32 = arith.constant 0 : i32
    %c0_i32_0 = arith.constant 0 : i32
    return %arg1, %c0_i32 : i32, i32
  }
  func.func @transform_3(%arg0: i32, %arg1: i32) -> (i32, i32) {
    %c0_i32 = arith.constant 0 : i32
    %c0_i32_0 = arith.constant 0 : i32
    return %arg0, %c0_i32 : i32, i32
  }
}

module attributes {stable_mosaic.version = 11 : i64} {
  func.func @_lookup_kernel(%arg0: i32, %arg1: i32, %arg2: memref<16x1xi32, #tpu.memory_space<vmem>>, %arg3: memref<64x128xbf16, #tpu.memory_space<vmem>>, %arg4: memref<64x128xbf16, #tpu.memory_space<vmem>>, %arg5: memref<16x128xf32, #tpu.memory_space<vmem>>) attributes {dimension_semantics = [#tpu.dimension_semantics<parallel>, #tpu.dimension_semantics<arbitrary>], iteration_bounds = array<i64: 1, 1>, scalar_prefetch = 0 : i64, scratch_operands = 0 : i64, tpu.core_type = #tpu.core_type<tc>, window_params = [{transform_indices = @transform_0, window_bounds = array<i64: 16, 1>}, {transform_indices = @transform_1, window_bounds = array<i64: 64, 128>}, {transform_indices = @transform_2, window_bounds = array<i64: 64, 128>}, {transform_indices = @transform_3, window_bounds = array<i64: 16, 128>}]} {
    %c0_i32 = arith.constant 0 : i32
    %0 = arith.cmpi eq, %arg1, %c0_i32 : i32
    %1 = arith.extui %0 : i1 to i32
    %c0_i32_0 = arith.constant 0 : i32
    %2 = arith.cmpi ne, %1, %c0_i32_0 : i32
    scf.if %2 {
      %cst_11 = arith.constant 0.000000e+00 : f32
      %22 = vector.broadcast %cst_11 : f32 to vector<16x128xf32>
      %c0_12 = arith.constant 0 : index
      %c0_13 = arith.constant 0 : index
      %23 = vector.load %arg5[%c0_12, %c0_13] : memref<16x128xf32, #tpu.memory_space<vmem>>, vector<16x128xf32>
      tpu.vector_store %arg5[%c0_12, %c0_13], %22 {strides = array<i32>} : memref<16x128xf32, #tpu.memory_space<vmem>>, vector<16x128xf32>,
    } else {
    }
    %c0 = arith.constant 0 : index
    %c0_1 = arith.constant 0 : index
    %3 = vector.load %arg2[%c0, %c0_1] : memref<16x1xi32, #tpu.memory_space<vmem>>, vector<16x1xi32>
    %c64_i32 = arith.constant 64 : i32
    %4 = arith.muli %arg1, %c64_i32 : i32
    %5 = tpu.iota {dimensions = array<i32: 1>} : vector<1x64xi32>
    %6 = vector.broadcast %4 : i32 to vector<1x64xi32>
    %7 = arith.addi %6, %5 : vector<1x64xi32>
    %8 = vector.broadcast %3 : vector<16x1xi32> to vector<16x64xi32>
    %9 = vector.broadcast %7 : vector<1x64xi32> to vector<16x64xi32>
    %10 = arith.cmpi eq, %8, %9 : vector<16x64xi32>
    %11 = arith.extui %10 : vector<16x64xi1> to vector<16x64xi32>
    %12 = arith.sitofp %11 : vector<16x64xi32> to vector<16x64xf32>
    %13 = arith.truncf %12 : vector<16x64xf32> to vector<16x64xbf16>
    %c0_2 = arith.constant 0 : index
    %c0_3 = arith.constant 0 : index
    %14 = vector.load %arg5[%c0_2, %c0_3] : memref<16x128xf32, #tpu.memory_space<vmem>>, vector<16x128xf32>
    %c0_4 = arith.constant 0 : index
    %c0_5 = arith.constant 0 : index
    %15 = vector.load %arg3[%c0_4, %c0_5] : memref<64x128xbf16, #tpu.memory_space<vmem>>, vector<64x128xbf16>
    %cst = arith.constant dense<0.000000e+00> : vector<16x128xf32>
    %16 = tpu.matmul %13, %15, %cst {dimension_numbers = #tpu.dot_dimension_numbers<[1], [0], [0], [1], [0, 0, 1, 1], [], []>} : vector<16x64xbf16>, vector<64x128xbf16>, vector<16x128xf32> -> vector<16x128xf32>
    %c0_6 = arith.constant 0 : index
    %c0_7 = arith.constant 0 : index
    %17 = vector.load %arg4[%c0_6, %c0_7] : memref<64x128xbf16, #tpu.memory_space<vmem>>, vector<64x128xbf16>
    %cst_8 = arith.constant dense<0.000000e+00> : vector<16x128xf32>
    %18 = tpu.matmul %13, %17, %cst_8 {dimension_numbers = #tpu.dot_dimension_numbers<[1], [0], [0], [1], [0, 0, 1, 1], [], []>} : vector<16x64xbf16>, vector<64x128xbf16>, vector<16x128xf32> -> vector<16x128xf32>
    %19 = arith.addf %16, %18 : vector<16x128xf32>
    %20 = arith.addf %14, %19 : vector<16x128xf32>
    %c0_9 = arith.constant 0 : index
    %c0_10 = arith.constant 0 : index
    %21 = vector.load %arg5[%c0_9, %c0_10] : memref<16x128xf32, #tpu.memory_space<vmem>>, vector<16x128xf32>
    tpu.vector_store %arg5[%c0_9, %c0_10], %20 {strides = array<i32>} : memref<16x128xf32, #tpu.memory_space<vmem>>, vector<16x128xf32>,
    return
  }
  func.func @transform_0(%arg0: i32, %arg1: i32) -> (i32, i32) {
    %c0_i32 = arith.constant 0 : i32
    %c0_i32_0 = arith.constant 0 : i32
    return %arg0, %c0_i32 : i32, i32
  }
  func.func @transform_1(%arg0: i32, %arg1: i32) -> (i32, i32) {
    %c0_i32 = arith.constant 0 : i32
    %c0_i32_0 = arith.constant 0 : i32
    return %arg1, %c0_i32 : i32, i32
  }
  func.func @transform_2(%arg0: i32, %arg1: i32) -> (i32, i32) {
    %c0_i32 = arith.constant 0 : i32
    %c0_i32_0 = arith.constant 0 : i32
    return %arg1, %c0_i32 : i32, i32
  }
  func.func @transform_3(%arg0: i32, %arg1: i32) -> (i32, i32) {
    %c0_i32 = arith.constant 0 : i32
    %c0_i32_0 = arith.constant 0 : i32
    return %arg0, %c0_i32 : i32, i32
  }
}

</mosaic_0001>

<bundles_post_ra>
// kernel: tpu_custom_call.1
= control target key start
LH: loop header
LB: loop body
LE: loop exit
PB: predicated region body
PF: predicated region fallthrough
CT: control target
= control target key end

     0   :  { %8 = vsyncpa [#allocation3], 0  ;;  %s453_s0 = inlined_call_operand.vmem [shape: s32[16,1], index: 0, kind: input, shape index: {}]   ;;  %s454_s1 = inlined_call_operand.hbm [shape: bf16[64,128], index: 1, kind: input, shape index: {}]   ;;  %s455_s2 = inlined_call_operand.hbm [shape: bf16[64,128], index: 2, kind: input, shape index: {}]   ;;  %s456_s3 = inlined_call_operand.hbm [shape: f32[16,128], index: 3, kind: output, shape index: {}]  }
   0x1   :  { %9 = vsyncpa [#allocation6], 0 }
   0x2   :  { %10 = vsyncpa [#allocation4], 0  ;;  %s381_s12 = smov [#allocation2]   ;;  %s309_s16 = scalar_lea.hbm %s454_s1, 512 }
   0x3   :  { %s18_s13 = sshll.u32 %s381_s12, 4  ;;  %p310_p0 = scmp.ne.s32.totalorder %s454_s1, %s309_s16  ;;  %s19_s13 = int_to_ptr.vmem [resolvable:$true] %s18_s13 }
   0x4   :  { %p313_p1 = scmp.lt.u32.totalorder %s309_s16, %s454_s1 }
   0x6   :  { %p315_p2 = pnand %p313_p1, %p310_p0 }
   0x8   :  { %318 = shalt.err (!%p315_p2)
}
   0x9   :  { %s319_s21 = scalar_lea.vmem %s19_s13, 512  ;;  %p324_p4 = scmp.lt.s32.totalorder %s19_s13, %s19_s13 }
   0xa   :  { %p320_p3 = scmp.ne.s32.totalorder %s19_s13, %s319_s21  ;;  %p325_p5 = scmp.lt.s32.totalorder %s319_s21, %s319_s21 }
   0xc   :  { %p326_p6 = por %p325_p5, %p324_p4 }
   0xe   :  { %p327_p7 = pnand %p326_p6, %p320_p3 }
  0x10   :  { %330 = shalt.err (!%p327_p7)
}
  0x11   :  { %s382_s22 = smov 64   ;;  %s383_s23 = smov 4  }
  0x12   :  { %24 = dma.hbm_to_vmem [thread:$0]  %s454_s1, 512, %s19_s13, [#allocation3], %s382_s22, %s382_s22, %s383_s23  }
  0x13   :  { %s384_s26 = smov [#allocation5]   ;;  %s331_s30 = scalar_lea.hbm %s455_s2, 512 }
  0x14   :  { %s30_s27 = sshll.u32 %s384_s26, 4  ;;  %p332_p8 = scmp.ne.s32.totalorder %s455_s2, %s331_s30  ;;  %s31_s27 = int_to_ptr.vmem [resolvable:$true] %s30_s27 }
  0x15   :  { %p335_p9 = scmp.lt.u32.totalorder %s331_s30, %s455_s2 }
  0x17   :  { %p337_p10 = pnand %p335_p9, %p332_p8 }
  0x19   :  { %340 = shalt.err (!%p337_p10)
}
  0x1a   :  { %s341_s8 = scalar_lea.vmem %s31_s27, 512  ;;  %p346_p12 = scmp.lt.s32.totalorder %s31_s27, %s31_s27 }
  0x1b   :  { %p342_p11 = scmp.ne.s32.totalorder %s31_s27, %s341_s8  ;;  %p347_p13 = scmp.lt.s32.totalorder %s341_s8, %s341_s8 }
  0x1d   :  { %p348_p0 = por %p347_p13, %p346_p12 }
  0x1f   :  { %p349_p1 = pnand %p348_p0, %p342_p11 }
  0x21   :  { %352 = shalt.err (!%p349_p1)
}
  0x22   :  { %36 = dma.hbm_to_vmem [thread:$0]  %s455_s2, 512, %s31_s27, [#allocation6], %s382_s22, %s382_s22, %s383_s23  }
  0x23   :  { %375 = dma.done.wait [#allocation3], 512  }
  0x24   :  { %376 = vsyncadd [#allocation3], 4294966784 }
  0x25   :  { %377 = dma.done.wait [#allocation6], 512  }
  0x26   :  { %378 = vsyncadd [#allocation6], 4294966784  ;;  %v385_v0 = vmov 0   ;;  %v386_v1 = vmov 0.0   ;;  %v50_v2 = vld [vmem:[%s453_s0] sm:$0xff]  ;;  %v51_v3 = vld [vmem:[%s453_s0 + $0x8] sm:$0xff]  ;;  %v53_v12 = vlaneseq }
  0x27   :  { %300 = vset.pattern.permute.xlu0 %v385_v0  ;;  %266 = vmatprep.subr.bf16.mxu0 %v386_v1  ;;  %v301_v4 = vld [vmem:[#allocation5] sm:$0xff]   ;;  %v303_v6 = vld [vmem:[#allocation5 + $0x8] sm:$0xff]   ;;  %v305_v8 = vld [vmem:[#allocation5 + $0x10] sm:$0xff]   ;;  %vm387_vm0 = vmmov 0   ;;  %vm112_vm3 = vcmask 523264   ;;  %s388_s0 = smov [#allocation7]  }
  0x28   :  { %278 = vmatprep.subr.bf16.mxu1 %v386_v1  ;;  %58 = vperm.xlu0 %300, %v50_v2   ;;  %v302_v5 = vld [vmem:[#allocation2] sm:$0xff]   ;;  %v304_v7 = vld [vmem:[#allocation2 + $0x8] sm:$0xff]   ;;  %v306_v9 = vld [vmem:[#allocation2 + $0x10] sm:$0xff]   ;;  %v54_v13 = vand.u32 127, %v53_v12  ;;  %s231_s2 = sshll.u32 %s388_s0, 4  ;;  %s232_s2 = int_to_ptr.vmem [resolvable:$true] %s231_s2 }
  0x29   :  { %267 = vmatpush3.bf16.msra.mxu0 %v301_v4  ;;  %279 = vmatpush3.bf16.msra.mxu1 %v302_v5  ;;  %v307_v10 = vld [vmem:[#allocation5 + $0x18] sm:$0xff]   ;;  %s353_s14 = scalar_lea.vmem %s232_s2, 256  ;;  %p358_p3 = scmp.lt.s32.totalorder %s232_s2, %s232_s2 }
  0x2a   :  { %268 = vmatprep.subr.bf16.mxu0 %v386_v1  ;;  %280 = vmatprep.subr.bf16.mxu1 %v386_v1  ;;  %v308_v11 = vld [vmem:[#allocation2 + $0x18] sm:$0xff]   ;;  %p354_p2 = scmp.ne.s32.totalorder %s232_s2, %s353_s14  ;;  %p359_p4 = scmp.lt.s32.totalorder %s353_s14, %s353_s14 }
  0x2b   :  { %274 = vmatprep.mubr.msk.bf16.mxu0 %vm387_vm0, %v386_v1  ;;  %286 = vmatprep.mubr.msk.bf16.mxu1 %vm387_vm0, %v386_v1 }
  0x2c   :  { %61 = vperm.xlu0 %300, %v51_v3   ;;  %p360_p5 = por %p359_p4, %p358_p3 }
  0x2d   :  { %269 = vmatpush3.bf16.msra.mxu0 %v303_v6  ;;  %281 = vmatpush3.bf16.msra.mxu1 %v304_v7 }
  0x2e   :  { %270 = vmatprep.subr.bf16.mxu0 %v386_v1  ;;  %282 = vmatprep.subr.bf16.mxu1 %v386_v1  ;;  %p361_p6 = pnand %p360_p5, %p354_p2 }
  0x31   :  { %271 = vmatpush3.bf16.msra.mxu0 %v305_v8  ;;  %283 = vmatpush3.bf16.msra.mxu1 %v306_v9 }
  0x32   :  { %272 = vmatprep.subr.bf16.mxu0 %v386_v1  ;;  %284 = vmatprep.subr.bf16.mxu1 %v386_v1 }
  0x35   :  { %273 = vmatpush3.bf16.msra.mxu0 %v307_v10  ;;  %285 = vmatpush3.bf16.msra.mxu1 %v308_v11 }
  0xa7   :  { %v59_v14 = vpop.permute.xlu0 %58 }
  0xa8   :  { %vm63_vm1 = vcmp.eq.s32.totalorder %v59_v14, %v54_v13 }
  0xa9   :  { %v244_v16 = vsel %vm63_vm1, 1.0, %v386_v1 }
  0xab   :  { %v62_v15 = vpop.permute.xlu0 %61 }
  0xac   :  { %vm64_vm2 = vcmp.eq.s32.totalorder %v62_v15, %v54_v13 }
  0xad   :  { %v245_v17 = vsel %vm64_vm2, 1.0, %v386_v1 }
  0xae   :  { %v69_v18 = vpack.c.bf16 %v245_v17, %v244_v16 }
  0xb0   :  { %275 = vmatmul.mubr.msk.bf16.vlgmr.msra.gmra.mrb[0].mxu0 %vm112_vm3, %v69_v18  ;;  %287 = vmatmul.mubr.msk.bf16.vlgmr.msra.gmra.mrb[0].mxu1 %vm112_vm3, %v69_v18 }
 0x183   :  { %v150_v19 = vpop.f32.mrb[0].mxu0  ;;  %v215_v20 = vpop.f32.mrb[0].mxu1 }
 0x184   :  { %v216_v21 = vadd.f32 %v215_v20, %v150_v19  ;;  %v276_v22 = vpop.f32.mrb[1].mxu0  ;;  %v288_v23 = vpop.f32.mrb[1].mxu1 }
 0x185   :  { %v153_v24 = vpop.f32.mrb[2].mxu0  ;;  %v218_v25 = vpop.f32.mrb[2].mxu1 }
 0x186   :  { %v219_v26 = vadd.f32 %v218_v25, %v153_v24  ;;  %v277_v27 = vpop.f32.mrb[3].mxu0  ;;  %v289_v28 = vpop.f32.mrb[3].mxu1  ;;  %224 = vst [vmem:[#allocation7] sm:$0xff] %v216_v21 }
 0x188   :  { %225 = vst [vmem:[#allocation7 + $0x8] sm:$0xff] %v219_v26 }
 0x189   :  { %364 = shalt.err (!%p361_p6)
}
 0x18a   :  { %s365_s17 = scalar_lea.hbm %s456_s3, 256 }
 0x18b   :  { %p366_p7 = scmp.ne.s32.totalorder %s456_s3, %s365_s17  ;;  %p369_p8 = scmp.lt.u32.totalorder %s365_s17, %s456_s3 }
 0x18d   :  { %p371_p9 = pnand %p369_p8, %p366_p7 }
 0x18f   :  { %374 = shalt.err (!%p371_p9)
}
 0x190   :  { %s389_s22 = smov 128   ;;  %s390_s23 = smov 8  }
 0x191   :  { %237 = dma.vmem_to_hbm [thread:$0]  %s232_s2, 256, %s456_s3, [#allocation4], %s389_s22, %s389_s22, %s390_s23  }
 0x192   :  { %379 = dma.done.wait [#allocation4], 256  }
 0x193   :  { %380 = vsyncadd [#allocation4], 4294967040 }
 0x194   :  { %241 = vsyncpa [#allocation3], 1 }
 0x195   :  { %242 = vsyncpa [#allocation6], 1 }
 0x196   :  { %243 = vsyncpa [#allocation4], 1 }

// kernel: tpu_custom_call.1
= control target key start
LH: loop header
LB: loop body
LE: loop exit
PB: predicated region body
PF: predicated region fallthrough
CT: control target
= control target key end

     0   :  { %8 = vsyncpa [#allocation3], 0  ;;  %s453_s0 = inlined_call_operand.vmem [shape: s32[16,1], index: 0, kind: input, shape index: {}]   ;;  %s454_s1 = inlined_call_operand.hbm [shape: bf16[64,128], index: 1, kind: input, shape index: {}]   ;;  %s455_s2 = inlined_call_operand.hbm [shape: bf16[64,128], index: 2, kind: input, shape index: {}]   ;;  %s456_s3 = inlined_call_operand.hbm [shape: f32[16,128], index: 3, kind: output, shape index: {}]  }
   0x1   :  { %9 = vsyncpa [#allocation6], 0 }
   0x2   :  { %10 = vsyncpa [#allocation4], 0  ;;  %s381_s12 = smov [#allocation2]   ;;  %s309_s16 = scalar_lea.hbm %s454_s1, 512 }
   0x3   :  { %s18_s13 = sshll.u32 %s381_s12, 4  ;;  %p310_p0 = scmp.ne.s32.totalorder %s454_s1, %s309_s16  ;;  %s19_s13 = int_to_ptr.vmem [resolvable:$true] %s18_s13 }
   0x4   :  { %p313_p1 = scmp.lt.u32.totalorder %s309_s16, %s454_s1 }
   0x6   :  { %p315_p2 = pnand %p313_p1, %p310_p0 }
   0x8   :  { %318 = shalt.err (!%p315_p2)
}
   0x9   :  { %s319_s21 = scalar_lea.vmem %s19_s13, 512  ;;  %p324_p4 = scmp.lt.s32.totalorder %s19_s13, %s19_s13 }
   0xa   :  { %p320_p3 = scmp.ne.s32.totalorder %s19_s13, %s319_s21  ;;  %p325_p5 = scmp.lt.s32.totalorder %s319_s21, %s319_s21 }
   0xc   :  { %p326_p6 = por %p325_p5, %p324_p4 }
   0xe   :  { %p327_p7 = pnand %p326_p6, %p320_p3 }
  0x10   :  { %330 = shalt.err (!%p327_p7)
}
  0x11   :  { %s382_s22 = smov 64   ;;  %s383_s23 = smov 4  }
  0x12   :  { %24 = dma.hbm_to_vmem [thread:$0]  %s454_s1, 512, %s19_s13, [#allocation3], %s382_s22, %s382_s22, %s383_s23  }
  0x13   :  { %s384_s26 = smov [#allocation5]   ;;  %s331_s30 = scalar_lea.hbm %s455_s2, 512 }
  0x14   :  { %s30_s27 = sshll.u32 %s384_s26, 4  ;;  %p332_p8 = scmp.ne.s32.totalorder %s455_s2, %s331_s30  ;;  %s31_s27 = int_to_ptr.vmem [resolvable:$true] %s30_s27 }
  0x15   :  { %p335_p9 = scmp.lt.u32.totalorder %s331_s30, %s455_s2 }
  0x17   :  { %p337_p10 = pnand %p335_p9, %p332_p8 }
  0x19   :  { %340 = shalt.err (!%p337_p10)
}
  0x1a   :  { %s341_s8 = scalar_lea.vmem %s31_s27, 512  ;;  %p346_p12 = scmp.lt.s32.totalorder %s31_s27, %s31_s27 }
  0x1b   :  { %p342_p11 = scmp.ne.s32.totalorder %s31_s27, %s341_s8  ;;  %p347_p13 = scmp.lt.s32.totalorder %s341_s8, %s341_s8 }
  0x1d   :  { %p348_p0 = por %p347_p13, %p346_p12 }
  0x1f   :  { %p349_p1 = pnand %p348_p0, %p342_p11 }
  0x21   :  { %352 = shalt.err (!%p349_p1)
}
  0x22   :  { %36 = dma.hbm_to_vmem [thread:$0]  %s455_s2, 512, %s31_s27, [#allocation6], %s382_s22, %s382_s22, %s383_s23  }
  0x23   :  { %375 = dma.done.wait [#allocation3], 512  }
  0x24   :  { %376 = vsyncadd [#allocation3], 4294966784 }
  0x25   :  { %377 = dma.done.wait [#allocation6], 512  }
  0x26   :  { %378 = vsyncadd [#allocation6], 4294966784  ;;  %v385_v0 = vmov 0   ;;  %v386_v1 = vmov 0.0   ;;  %v50_v2 = vld [vmem:[%s453_s0] sm:$0xff]  ;;  %v51_v3 = vld [vmem:[%s453_s0 + $0x8] sm:$0xff]  ;;  %v53_v12 = vlaneseq }
  0x27   :  { %300 = vset.pattern.permute.xlu0 %v385_v0  ;;  %266 = vmatprep.subr.bf16.mxu0 %v386_v1  ;;  %v301_v4 = vld [vmem:[#allocation5] sm:$0xff]   ;;  %v303_v6 = vld [vmem:[#allocation5 + $0x8] sm:$0xff]   ;;  %v305_v8 = vld [vmem:[#allocation5 + $0x10] sm:$0xff]   ;;  %vm387_vm0 = vmmov 0   ;;  %vm112_vm3 = vcmask 523264   ;;  %s388_s0 = smov [#allocation7]  }
  0x28   :  { %278 = vmatprep.subr.bf16.mxu1 %v386_v1  ;;  %58 = vperm.xlu0 %300, %v50_v2   ;;  %v302_v5 = vld [vmem:[#allocation2] sm:$0xff]   ;;  %v304_v7 = vld [vmem:[#allocation2 + $0x8] sm:$0xff]   ;;  %v306_v9 = vld [vmem:[#allocation2 + $0x10] sm:$0xff]   ;;  %v54_v13 = vand.u32 127, %v53_v12  ;;  %s231_s2 = sshll.u32 %s388_s0, 4  ;;  %s232_s2 = int_to_ptr.vmem [resolvable:$true] %s231_s2 }
  0x29   :  { %267 = vmatpush3.bf16.msra.mxu0 %v301_v4  ;;  %279 = vmatpush3.bf16.msra.mxu1 %v302_v5  ;;  %v307_v10 = vld [vmem:[#allocation5 + $0x18] sm:$0xff]   ;;  %s353_s14 = scalar_lea.vmem %s232_s2, 256  ;;  %p358_p3 = scmp.lt.s32.totalorder %s232_s2, %s232_s2 }
  0x2a   :  { %268 = vmatprep.subr.bf16.mxu0 %v386_v1  ;;  %280 = vmatprep.subr.bf16.mxu1 %v386_v1  ;;  %v308_v11 = vld [vmem:[#allocation2 + $0x18] sm:$0xff]   ;;  %p354_p2 = scmp.ne.s32.totalorder %s232_s2, %s353_s14  ;;  %p359_p4 = scmp.lt.s32.totalorder %s353_s14, %s353_s14 }
  0x2b   :  { %274 = vmatprep.mubr.msk.bf16.mxu0 %vm387_vm0, %v386_v1  ;;  %286 = vmatprep.mubr.msk.bf16.mxu1 %vm387_vm0, %v386_v1 }
  0x2c   :  { %61 = vperm.xlu0 %300, %v51_v3   ;;  %p360_p5 = por %p359_p4, %p358_p3 }
  0x2d   :  { %269 = vmatpush3.bf16.msra.mxu0 %v303_v6  ;;  %281 = vmatpush3.bf16.msra.mxu1 %v304_v7 }
  0x2e   :  { %270 = vmatprep.subr.bf16.mxu0 %v386_v1  ;;  %282 = vmatprep.subr.bf16.mxu1 %v386_v1  ;;  %p361_p6 = pnand %p360_p5, %p354_p2 }
  0x31   :  { %271 = vmatpush3.bf16.msra.mxu0 %v305_v8  ;;  %283 = vmatpush3.bf16.msra.mxu1 %v306_v9 }
  0x32   :  { %272 = vmatprep.subr.bf16.mxu0 %v386_v1  ;;  %284 = vmatprep.subr.bf16.mxu1 %v386_v1 }
  0x35   :  { %273 = vmatpush3.bf16.msra.mxu0 %v307_v10  ;;  %285 = vmatpush3.bf16.msra.mxu1 %v308_v11 }
  0xa7   :  { %v59_v14 = vpop.permute.xlu0 %58 }
  0xa8   :  { %vm63_vm1 = vcmp.eq.s32.totalorder %v59_v14, %v54_v13 }
  0xa9   :  { %v244_v16 = vsel %vm63_vm1, 1.0, %v386_v1 }
  0xab   :  { %v62_v15 = vpop.permute.xlu0 %61 }
  0xac   :  { %vm64_vm2 = vcmp.eq.s32.totalorder %v62_v15, %v54_v13 }
  0xad   :  { %v245_v17 = vsel %vm64_vm2, 1.0, %v386_v1 }
  0xae   :  { %v69_v18 = vpack.c.bf16 %v245_v17, %v244_v16 }
  0xb0   :  { %275 = vmatmul.mubr.msk.bf16.vlgmr.msra.gmra.mrb[0].mxu0 %vm112_vm3, %v69_v18  ;;  %287 = vmatmul.mubr.msk.bf16.vlgmr.msra.gmra.mrb[0].mxu1 %vm112_vm3, %v69_v18 }
 0x183   :  { %v150_v19 = vpop.f32.mrb[0].mxu0  ;;  %v215_v20 = vpop.f32.mrb[0].mxu1 }
 0x184   :  { %v216_v21 = vadd.f32 %v215_v20, %v150_v19  ;;  %v276_v22 = vpop.f32.mrb[1].mxu0  ;;  %v288_v23 = vpop.f32.mrb[1].mxu1 }
 0x185   :  { %v153_v24 = vpop.f32.mrb[2].mxu0  ;;  %v218_v25 = vpop.f32.mrb[2].mxu1 }
 0x186   :  { %v219_v26 = vadd.f32 %v218_v25, %v153_v24  ;;  %v277_v27 = vpop.f32.mrb[3].mxu0  ;;  %v289_v28 = vpop.f32.mrb[3].mxu1  ;;  %224 = vst [vmem:[#allocation7] sm:$0xff] %v216_v21 }
 0x188   :  { %225 = vst [vmem:[#allocation7 + $0x8] sm:$0xff] %v219_v26 }
 0x189   :  { %364 = shalt.err (!%p361_p6)
}
 0x18a   :  { %s365_s17 = scalar_lea.hbm %s456_s3, 256 }
 0x18b   :  { %p366_p7 = scmp.ne.s32.totalorder %s456_s3, %s365_s17  ;;  %p369_p8 = scmp.lt.u32.totalorder %s365_s17, %s456_s3 }
 0x18d   :  { %p371_p9 = pnand %p369_p8, %p366_p7 }
 0x18f   :  { %374 = shalt.err (!%p371_p9)
}
 0x190   :  { %s389_s22 = smov 128   ;;  %s390_s23 = smov 8  }
 0x191   :  { %237 = dma.vmem_to_hbm [thread:$0]  %s232_s2, 256, %s456_s3, [#allocation4], %s389_s22, %s389_s22, %s390_s23  }
 0x192   :  { %379 = dma.done.wait [#allocation4], 256  }
 0x193   :  { %380 = vsyncadd [#allocation4], 4294967040 }
 0x194   :  { %241 = vsyncpa [#allocation3], 1 }
 0x195   :  { %242 = vsyncpa [#allocation6], 1 }
 0x196   :  { %243 = vsyncpa [#allocation4], 1 }

</bundles_post_ra>
